<compile_context>
chip_gen: v6e
topology: v6e:2x2x1
jax: 0.10.0
libtpu: 0.0.40
codegen_flags: <defaults>
</compile_context>

<pallas_src>
import functools
import math

import jax
import jax.numpy as jnp
from jax import lax
from jax.experimental import pallas as pl
from jax.experimental.pallas import tpu as pltpu


# ---------------------------------------------------------------------------
# Kernel
# ---------------------------------------------------------------------------
def _token_sparse_kernel(rank_ref, score_ref, tokens_ref,
                         sel_ref, extra_ref, mask_ref,
                         *, approx_recip, precision):
    # Block shapes:
    #   rank_ref:   (Bt, 1, L)  int32   rank of each position in descending order
    #   score_ref:  (Bt, 1, L)  f32
    #   tokens_ref: (Bt, L, Ct) tokens dtype (bf16/f32)
    #   sel_ref:    (Bt, K, Ct)
    #   extra_ref:  (Bt, 1, Ct)
    #   mask_ref:   (Bt, 1, L)  f32
    Bt, K, Ct = sel_ref.shape
    L = tokens_ref.shape[1]

    rank = rank_ref[...]                                    # (Bt, 1, L) int32
    score = score_ref[...]                                  # (Bt, 1, L) f32

    # keep mask: position l is kept iff its rank is in the top-K.
    keep_mask = (rank < K).astype(jnp.float32)              # (Bt, 1, L)
    mask_ref[...] = keep_mask.astype(mask_ref.dtype)

    tokens = tokens_ref[...]                                # (Bt, L, Ct) native dtype

    # One-hot gather rows: onehot[b, k, l] = (rank[b, l] == k).  The row iota is
    # (1, K, L) and broadcasts against rank at compare time (no (Bt,K,L) int32
    # temporary, no extra where pass).
    iota_k = lax.broadcasted_iota(jnp.int32, (1, K, L), 1)
    onehot = (iota_k == rank).astype(jnp.float32).astype(tokens.dtype)  # (Bt, K, L)

    # select_tokens: (Bt, K, L) @ (Bt, L, Ct) -> (Bt, K, Ct), stored directly
    # (no unaligned slice of a fused result -> no relayout copy per step).
    sel = jnp.einsum("bkl,blc->bkc", onehot, tokens,
                     preferred_element_type=jnp.float32, precision=precision)
    sel_ref[...] = sel.astype(sel_ref.dtype)

    # Softmax weights over the NON-kept positions (order-invariant, so the
    # sorted order never needs to be materialized).  Mask via a big subtract;
    # exp underflows kept positions to exactly 0.
    if K < L:
        s_masked = score - keep_mask * jnp.float32(1e30)    # (Bt, 1, L)
        m = jnp.max(s_masked, axis=2, keepdims=True)        # (Bt, 1, 1)
        e = jnp.exp(s_masked - m)                           # kept -> 0
        denom = jnp.sum(e, axis=2, keepdims=True)           # (Bt, 1, 1)
        w = e * pl.reciprocal(denom, approx=approx_recip)   # (Bt, 1, L)
        # TODO(synk): for bf16 tokens the weight row is cast to bf16 before the
        # MXU, so extra_token is slightly less precise than torch's f32 weights.
        extra = jnp.einsum("bol,blc->boc", w.astype(tokens.dtype), tokens,
                           preferred_element_type=jnp.float32,
                           precision=precision)             # (Bt, 1, Ct)
    else:
        # All tokens kept: torch's sum over the empty gather is exactly 0.
        extra = jnp.zeros((Bt, 1, Ct), jnp.float32)

    extra_ref[...] = extra.astype(extra_ref.dtype)


# ---------------------------------------------------------------------------
# VMEM-aware tiling policy
# ---------------------------------------------------------------------------
def _round_up(x, m):
    return ((x + m - 1) // m) * m


def _divisors(n):
    return [d for d in range(1, n + 1) if n % d == 0]


def _vmem_capacity_bytes():
    try:
        info = pltpu.get_tpu_info()
        cap = getattr(info, "vmem_capacity_bytes", None)
        if cap:
            return int(cap)
    except Exception:  # pragma: no cover
        pass
    return 64 * 1024 * 1024  # conservative fallback (v7x per-TC VMEM)


def _per_step_vmem_bytes(bt, L, ct, K, tok_bytes):
    """Rough VMEM footprint of one grid step (double-buffered I/O + temporaries)."""
    Lp = _round_up(L, 128)
    Cp = _round_up(ct, 128)
    Ls = _round_up(L, 8)
    Kp = _round_up(K, 8)
    io = 2 * bt * (                                   # x2: pipeline double-buffer
        Ls * Cp * tok_bytes                           # tokens
        + Kp * Cp * tok_bytes                         # select_tokens
        + 8 * Cp * tok_bytes                          # extra_token
        + 3 * 8 * Lp * 4                              # rank, score, mask
    )
    scratch = bt * (
        Kp * Lp * tok_bytes                           # one-hot LHS
        + Kp * Lp * 4                                 # compare intermediate
        + Kp * Cp * 4                                 # f32 sel matmul result
        + 8 * Cp * 4                                  # f32 extra matmul result
        + 4 * 8 * Lp * 4                              # masked score / exp / weights
    ) + Kp * Lp * 4                                   # row iota (1, K, L)
    return io + scratch


def _choose_tiling(B, L, C, K, tok_dtype, block_b=None, block_c=None):
    tok_bytes = jnp.dtype(tok_dtype).itemsize
    cap = _vmem_capacity_bytes()
    budget = int(cap * 0.3)                           # headroom for compiler scratch

    # --- C tile: full C unless even a single-batch block overflows the budget.
    if block_c is not None:
        ct = int(block_c)
        assert C % ct == 0, "block_c must divide C"
        assert ct == C or ct % 128 == 0, "block_c must be a multiple of 128 (or C)"
    else:
        ct = C
        if _per_step_vmem_bytes(1, L, C, K, tok_bytes) > budget:
            cands = [d for d in _divisors(C) if d % 128 == 0]
            fitting = [d for d in cands
                       if _per_step_vmem_bytes(1, L, d, K, tok_bytes) <= budget]
            if fitting:
                ct = max(fitting)
            elif cands:
                ct = min(cands)   # best effort; vmem_limit raised below
            # else: C has no 128-multiple divisor; keep ct = C (may be tight).

    cg = C // ct

    # --- Batch tile: smallest Bt whose tokens block reaches ~2 MiB, subject to
    #     the VMEM budget and at least ~8 total grid steps when B allows it
    #     (also guarantees a multi-step grid so v7x can use both TensorCores).
    if block_b is not None:
        bt = int(block_b)
        assert B % bt == 0, "block_b must divide B"
    else:
        divs = _divisors(B)
        fitting = [d for d in divs
                   if _per_step_vmem_bytes(d, L, ct, K, tok_bytes) <= budget] or [1]
        min_steps = min(8, B * cg)
        step_ok = [d for d in fitting if (B // d) * cg >= min_steps] or [min(fitting)]
        tok_tile = lambda d: d * _round_up(L, 8) * _round_up(ct, 128) * tok_bytes
        big_enough = [d for d in step_ok if tok_tile(d) >= 2 * 1024 * 1024]
        bt = min(big_enough) if big_enough else max(step_ok)

    need = _per_step_vmem_bytes(bt, L, ct, K, tok_bytes)
    vmem_limit = int(min(cap * 0.9, max(32 * 1024 * 1024, 2 * need)))
    return bt, ct, vmem_limit


# ---------------------------------------------------------------------------
# Wrapper
# ---------------------------------------------------------------------------
def token_sparse(tokens, attention_x, attention_y, sparse_ratio=0.6,
                 *, block_b=None, block_c=None, approx_recip=False,
                 mxu_precision=None):
    """Pallas implementation of TokenSparse.forward.

    Returns (select_tokens (B,K,C), extra_token (B,1,C), score_mask (B,L)).
    """
    B, L, C = tokens.shape
    K = min(L, math.ceil(L * sparse_ratio))

    score = (attention_x + attention_y).astype(jnp.float32)          # (B, L)
    # Descending sort stays in plain-JAX glue (no Pallas TPU sort primitive).
    # Ship the *rank* of every position (inverse permutation of the argsort) so
    # the kernel only needs lane-dense compares.
    # TODO(synk): argsort tie-breaking may differ from torch.sort(descending=True)
    # on exactly-equal scores.
    score_index = jnp.argsort(-score, axis=1)                        # (B, L)
    rank = jnp.argsort(score_index, axis=1).astype(jnp.int32)        # inverse perm

    rank_r = rank.reshape(B, 1, L)
    score_r = score.reshape(B, 1, L)

    if mxu_precision is None:
        # Exact gather for f32 tokens (matches torch.gather); bf16 tokens are
        # exact on the native single-pass MXU path already.
        mxu_precision = (lax.Precision.HIGHEST
                         if jnp.dtype(tokens.dtype) == jnp.float32
                         else lax.Precision.DEFAULT)

    Bt, Ct, vmem_limit = _choose_tiling(B, L, C, K, tokens.dtype, block_b, block_c)
    grid = (B // Bt, C // Ct)

    out_shapes = (
        jax.ShapeDtypeStruct((B, K, C), tokens.dtype),   # select_tokens
        jax.ShapeDtypeStruct((B, 1, C), tokens.dtype),   # extra_token
        jax.ShapeDtypeStruct((B, 1, L), score.dtype),    # score_mask (reshaped below)
    )

    kernel = functools.partial(_token_sparse_kernel,
                               approx_recip=approx_recip,
                               precision=mxu_precision)

    sel, extra, mask = pl.pallas_call(
        kernel,
        out_shape=out_shapes,
        grid=grid,
        in_specs=[
            pl.BlockSpec((Bt, 1, L), lambda b, c: (b, 0, 0)),    # rank  (lane-dense)
            pl.BlockSpec((Bt, 1, L), lambda b, c: (b, 0, 0)),    # score (lane-dense)
            pl.BlockSpec((Bt, L, Ct), lambda b, c: (b, 0, c)),   # tokens
        ],
        out_specs=(
            pl.BlockSpec((Bt, K, Ct), lambda b, c: (b, 0, c)),
            pl.BlockSpec((Bt, 1, Ct), lambda b, c: (b, 0, c)),
            pl.BlockSpec((Bt, 1, L), lambda b, c: (b, 0, 0)),    # resident across c
        ),
        compiler_params=pltpu.CompilerParams(
            dimension_semantics=("parallel", "arbitrary"),       # batch sharded on v7x
            vmem_limit_bytes=vmem_limit,
        ),
    )(rank_r, score_r, tokens)

    return sel, extra, mask.reshape(B, L)


# ---------------------------------------------------------------------------
# Pure-JAX reference mirroring the PyTorch forward
# ---------------------------------------------------------------------------
def token_sparse_ref(tokens, attention_x, attention_y, sparse_ratio=0.6):
    B, L, C = tokens.shape
    K = math.ceil(L * sparse_ratio)
    score = attention_x + attention_y
    idx = jnp.argsort(-score, axis=1)
    score_sort = jnp.take_along_axis(score, idx, axis=1)
    keep = idx[:, :K]
    mask = jnp.zeros_like(score).at[jnp.arange(B)[:, None], keep].set(1.0)
    sel = jnp.take_along_axis(
        tokens, jnp.broadcast_to(keep[:, :, None], (B, K, C)), axis=1)
    non = idx[:, K:]
    non_tok = jnp.take_along_axis(
        tokens, jnp.broadcast_to(non[:, :, None], (B, L - K, C)), axis=1)
    w = jax.nn.softmax(score_sort[:, K:], axis=1)[:, :, None]
    extra = jnp.sum(non_tok * w, axis=1, keepdims=True)
    return sel, extra, mask


if __name__ == "__main__":
    key = jax.random.PRNGKey(0)
    k1, k2, k3 = jax.random.split(key, 3)
    B, L, C = 8, 16, 256          # small, lane-dense embed dim (module default is 512)
    sparse_ratio = 0.6            # K = ceil(16 * 0.6) = 10

    tokens = jax.random.normal(k1, (B, L, C), dtype=jnp.float32)
    attention_x = jax.random.normal(k2, (B, L), dtype=jnp.float32)
    attention_y = jax.random.normal(k3, (B, L), dtype=jnp.float32)

    # Auto tiling: policy targets >= 8 grid steps -> Bt = 1 here, grid (8, 1).
    sel, extra, mask = token_sparse(tokens, attention_x, attention_y, sparse_ratio)
    jax.block_until_ready((sel, extra, mask))

    # Forced batch block of 2 + C tile of 128 -> grid (4, 2); exercises the
    # C-tiling path with rank/score/mask resident across the C axis.
    sel2, extra2, mask2 = token_sparse(tokens, attention_x, attention_y,
                                       sparse_ratio, block_b=2, block_c=128)
    jax.block_until_ready((sel2, extra2, mask2))

    sel_r, extra_r, mask_r = token_sparse_ref(tokens, attention_x, attention_y,
                                              sparse_ratio)

    K = math.ceil(L * sparse_ratio)
    assert sel.shape == (B, K, C) and extra.shape == (B, 1, C) and mask.shape == (B, L)
    for s, e, m in ((sel, extra, mask), (sel2, extra2, mask2)):
        assert jnp.allclose(m, mask_r)
        assert jnp.allclose(s, sel_r, atol=1e-5, rtol=1e-5)
        assert jnp.allclose(e, extra_r, atol=1e-5, rtol=1e-5)

    print("KERNEL_OK")
</pallas_src>

<mosaic_0001>
module attributes {stable_mosaic.version = 11 : i64} {
  func.func @_token_sparse_kernel(%arg0: i32, %arg1: i32, %arg2: memref<1x1x16xi32, #tpu.memory_space<vmem>>, %arg3: memref<1x1x16xf32, #tpu.memory_space<vmem>>, %arg4: memref<1x16x256xf32, #tpu.memory_space<vmem>>, %arg5: memref<1x10x256xf32, #tpu.memory_space<vmem>>, %arg6: memref<1x1x256xf32, #tpu.memory_space<vmem>>, %arg7: memref<1x1x16xf32, #tpu.memory_space<vmem>>) attributes {dimension_semantics = [#tpu.dimension_semantics<parallel>, #tpu.dimension_semantics<arbitrary>], iteration_bounds = array<i64: 8, 1>, scalar_prefetch = 0 : i64, scratch_operands = 0 : i64, tpu.core_type = #tpu.core_type<tc>, window_params = [{transform_indices = @transform_0, window_bounds = array<i64: 1, 1, 16>}, {transform_indices = @transform_1, window_bounds = array<i64: 1, 1, 16>}, {transform_indices = @transform_2, window_bounds = array<i64: 1, 16, 256>}, {transform_indices = @transform_3, window_bounds = array<i64: 1, 10, 256>}, {transform_indices = @transform_4, window_bounds = array<i64: 1, 1, 256>}, {transform_indices = @transform_5, window_bounds = array<i64: 1, 1, 16>}]} {
    %c0 = arith.constant 0 : index
    %c0_0 = arith.constant 0 : index
    %c0_1 = arith.constant 0 : index
    %0 = vector.load %arg2[%c0, %c0_0, %c0_1] : memref<1x1x16xi32, #tpu.memory_space<vmem>>, vector<1x1x16xi32>
    %c0_2 = arith.constant 0 : index
    %c0_3 = arith.constant 0 : index
    %c0_4 = arith.constant 0 : index
    %1 = vector.load %arg3[%c0_2, %c0_3, %c0_4] : memref<1x1x16xf32, #tpu.memory_space<vmem>>, vector<1x1x16xf32>
    %c10_i32 = arith.constant 10 : i32
    %2 = vector.broadcast %c10_i32 : i32 to vector<1x1x16xi32>
    %3 = arith.cmpi slt, %0, %2 : vector<1x1x16xi32>
    %4 = arith.extui %3 : vector<1x1x16xi1> to vector<1x1x16xi32>
    %5 = arith.sitofp %4 : vector<1x1x16xi32> to vector<1x1x16xf32>
    %c0_5 = arith.constant 0 : index
    %c0_6 = arith.constant 0 : index
    %c0_7 = arith.constant 0 : index
    %6 = vector.load %arg7[%c0_5, %c0_6, %c0_7] : memref<1x1x16xf32, #tpu.memory_space<vmem>>, vector<1x1x16xf32>
    tpu.vector_store %arg7[%c0_5, %c0_6, %c0_7], %5 {strides = array<i32>} : memref<1x1x16xf32, #tpu.memory_space<vmem>>, vector<1x1x16xf32>,
    %c0_8 = arith.constant 0 : index
    %c0_9 = arith.constant 0 : index
    %c0_10 = arith.constant 0 : index
    %7 = vector.load %arg4[%c0_8, %c0_9, %c0_10] : memref<1x16x256xf32, #tpu.memory_space<vmem>>, vector<1x16x256xf32>
    %8 = tpu.iota {dimensions = array<i32: 1>} : vector<1x10x16xi32>
    %9 = vector.broadcast %0 : vector<1x1x16xi32> to vector<1x10x16xi32>
    %10 = arith.cmpi eq, %8, %9 : vector<1x10x16xi32>
    %11 = arith.extui %10 : vector<1x10x16xi1> to vector<1x10x16xi32>
    %12 = arith.sitofp %11 : vector<1x10x16xi32> to vector<1x10x16xf32>
    "tpu.trace_start"() <{level = 10 : i32, message = "bkl,blc->bkc"}> : () -> ()
    %cst = arith.constant dense<0.000000e+00> : vector<1x10x256xf32>
    %13 = tpu.matmul %12, %7, %cst {dimension_numbers = #tpu.dot_dimension_numbers<[2], [1], [1], [2], [0, 0, 0, 1, 1, 2], [0], [0]>, precision = #tpu.contract_precision<fp32>} : vector<1x10x16xf32>, vector<1x16x256xf32>, vector<1x10x256xf32> -> vector<1x10x256xf32>
    "tpu.trace_stop"() : () -> ()
    %c0_11 = arith.constant 0 : index
    %c0_12 = arith.constant 0 : index
    %c0_13 = arith.constant 0 : index
    %14 = vector.load %arg5[%c0_11, %c0_12, %c0_13] : memref<1x10x256xf32, #tpu.memory_space<vmem>>, vector<1x10x256xf32>
    tpu.vector_store %arg5[%c0_11, %c0_12, %c0_13], %13 {strides = array<i32>} : memref<1x10x256xf32, #tpu.memory_space<vmem>>, vector<1x10x256xf32>,
    %cst_14 = arith.constant 1.000000e+30 : f32
    %15 = vector.broadcast %cst_14 : f32 to vector<1x1x16xf32>
    %16 = arith.mulf %5, %15 : vector<1x1x16xf32>
    %17 = arith.subf %1, %16 : vector<1x1x16xf32>
    %cst_15 = arith.constant dense<0xFF800000> : vector<1x1xf32>
    %18 = vector.multi_reduction <maximumf>, %17, %cst_15 [2] : vector<1x1x16xf32> to vector<1x1xf32>
    %19 = vector.shape_cast %18 : vector<1x1xf32> to vector<1x1x1xf32>
    %20 = vector.broadcast %19 : vector<1x1x1xf32> to vector<1x1x16xf32>
    %21 = arith.subf %17, %20 : vector<1x1x16xf32>
    %22 = math.exp %21 : vector<1x1x16xf32>
    %cst_16 = arith.constant dense<0.000000e+00> : vector<1x1xf32>
    %23 = vector.multi_reduction <add>, %22, %cst_16 [2] : vector<1x1x16xf32> to vector<1x1xf32>
    %24 = vector.shape_cast %23 : vector<1x1xf32> to vector<1x1x1xf32>
    %25 = tpu.reciprocal %24 : vector<1x1x1xf32> -> vector<1x1x1xf32>
    %26 = vector.broadcast %25 : vector<1x1x1xf32> to vector<1x1x16xf32>
    %27 = arith.mulf %22, %26 : vector<1x1x16xf32>
    "tpu.trace_start"() <{level = 10 : i32, message = "bol,blc->boc"}> : () -> ()
    %cst_17 = arith.constant dense<0.000000e+00> : vector<1x1x256xf32>
    %28 = tpu.matmul %27, %7, %cst_17 {dimension_numbers = #tpu.dot_dimension_numbers<[2], [1], [1], [2], [0, 0, 0, 1, 1, 2], [0], [0]>, precision = #tpu.contract_precision<fp32>} : vector<1x1x16xf32>, vector<1x16x256xf32>, vector<1x1x256xf32> -> vector<1x1x256xf32>
    "tpu.trace_stop"() : () -> ()
    %c0_18 = arith.constant 0 : index
    %c0_19 = arith.constant 0 : index
    %c0_20 = arith.constant 0 : index
    %29 = vector.load %arg6[%c0_18, %c0_19, %c0_20] : memref<1x1x256xf32, #tpu.memory_space<vmem>>, vector<1x1x256xf32>
    tpu.vector_store %arg6[%c0_18, %c0_19, %c0_20], %28 {strides = array<i32>} : memref<1x1x256xf32, #tpu.memory_space<vmem>>, vector<1x1x256xf32>,
    return
  }
  func.func @transform_0(%arg0: i32, %arg1: i32) -> (i32, i32, i32) {
    %c0_i32 = arith.constant 0 : i32
    %c0_i32_0 = arith.constant 0 : i32
    %c0_i32_1 = arith.constant 0 : i32
    return %arg0, %c0_i32, %c0_i32_0 : i32, i32, i32
  }
  func.func @transform_1(%arg0: i32, %arg1: i32) -> (i32, i32, i32) {
    %c0_i32 = arith.constant 0 : i32
    %c0_i32_0 = arith.constant 0 : i32
    %c0_i32_1 = arith.constant 0 : i32
    return %arg0, %c0_i32, %c0_i32_0 : i32, i32, i32
  }
  func.func @transform_2(%arg0: i32, %arg1: i32) -> (i32, i32, i32) {
    %c0_i32 = arith.constant 0 : i32
    %c0_i32_0 = arith.constant 0 : i32
    return %arg0, %c0_i32, %arg1 : i32, i32, i32
  }
  func.func @transform_3(%arg0: i32, %arg1: i32) -> (i32, i32, i32) {
    %c0_i32 = arith.constant 0 : i32
    %c0_i32_0 = arith.constant 0 : i32
    return %arg0, %c0_i32, %arg1 : i32, i32, i32
  }
  func.func @transform_4(%arg0: i32, %arg1: i32) -> (i32, i32, i32) {
    %c0_i32 = arith.constant 0 : i32
    %c0_i32_0 = arith.constant 0 : i32
    return %arg0, %c0_i32, %arg1 : i32, i32, i32
  }
  func.func @transform_5(%arg0: i32, %arg1: i32) -> (i32, i32, i32) {
    %c0_i32 = arith.constant 0 : i32
    %c0_i32_0 = arith.constant 0 : i32
    %c0_i32_1 = arith.constant 0 : i32
    return %arg0, %c0_i32, %c0_i32_0 : i32, i32, i32
  }
}

</mosaic_0001>

<bundles_post_ra>
// kernel: tpu_custom_call.1
= control target key start
LH: loop header
LB: loop body
LE: loop exit
PB: predicated region body
PF: predicated region fallthrough
CT: control target
= control target key end

     0   :  { %s2403_s0 = inlined_call_operand.hbm [shape: s32[8,1,16], index: 0, kind: input, shape index: {}]   ;;  %s2404_s1 = inlined_call_operand.hbm [shape: f32[8,1,16], index: 1, kind: input, shape index: {}]   ;;  %s2405_s2 = inlined_call_operand.hbm [shape: f32[8,16,256], index: 2, kind: input, shape index: {}]   ;;  %s2406_s3 = inlined_call_operand.vmem [shape: f32[8,10,256], index: 3, kind: output, shape index: {0}]   ;;  %s2407_s4 = inlined_call_operand.hbm [shape: f32[8,1,256], index: 4, kind: output, shape index: {1}]   ;;  %s2408_s5 = inlined_call_operand.hbm [shape: f32[8,1,16], index: 5, kind: output, shape index: {2}]  }
   0x1   :  { %2411 = sst [smem:[#allocation18_spill]] %s2403_s0 }
   0x2   :  { %2412 = sst [smem:[#allocation19_spill]] %s2404_s1 }
   0x3   :  { %11 = vsyncpa [#allocation3], 0 }
   0x4   :  { %13 = vsyncpa [#allocation3 + $0x1], 0 }
   0x5   :  { %14 = vsyncpa [#allocation6], 0 }
   0x6   :  { %16 = vsyncpa [#allocation6 + $0x1], 0 }
   0x7   :  { %17 = vsyncpa [#allocation4], 0 }
   0x8   :  { %19 = vsyncpa [#allocation4 + $0x1], 0 }
   0x9   :  { %20 = vsyncpa [#allocation10], 0 }
   0xa   :  { %22 = vsyncpa [#allocation10 + $0x1], 0  ;;  %s2055_s18 = smov 0   ;;  %s2057_s19 = smov 0  }
   0xb   :  { %s2059_s20 = smov 0   ;;  %s2061_s21 = smov 0  }
   0xc   :  { %s2063_s22 = smov 0   ;;  %s2065_s23 = smov 0  }
   0xd LB: > { %2413 = sst [smem:[#allocation15_spill]] %s2010_s22  ;;  %s2086_s24 = sadd.s32 4294967295, %s2014_s23   ;;  %s2014_s23 = sphi %s2065_s23, %s28_s23   ;;  %s2010_s22 = sphi %s2063_s22, %s2427_s22   ;;  %s2006_s21 = sphi %s2061_s21, %s2426_s21   ;;  %s2002_s20 = sphi %s2059_s20, %s2430_s20   ;;  %s1998_s19 = sphi %s2057_s19, %s2429_s19   ;;  %s1994_s18 = sphi %s2055_s18, %s2428_s18  }
   0xe   : > { %s1700_s25 = sadd.s32 4294967294, %s2014_s23   ;;  %s40_s26 = sadd.s32 1, %s2010_s22 }
   0xf   : > { %s47_s27 = sadd.s32 1, %s2002_s20  ;;  %p42_p0 = scmp.ge.s32.totalorder %s40_s26, 8 }
  0x10   : > { %p54_p1 = scmp.ne.s32.totalorder %s2002_s20, %s1998_s19  ;;  %p55_p2 = scmp.eq.s32.totalorder %s2014_s23, 0 }
  0x11   : > { %p60_p3 = scmp.ne.s32.totalorder %s1998_s19, %s1994_s18  ;;  %s2432_s26 = smov (%p42_p0, %s40_s26), 0 }
  0x12   : > { %2414 = sst [smem:[#allocation16_spill]] %s2432_s26  ;;  %p2098_p4 = por %p55_p2, %p54_p1 }
  0x13   : > { %p61_p5 = scmp.eq.s32.totalorder %s2086_s24, 0  ;;  %s44_s29 = ssub.s32 %s2010_s22, %s2432_s26 }
  0x14   : > { %p168_p6 = scmp.eq.s32.totalorder %s2086_s24, 7  ;;  %p45_p7 = scmp.eq.s32.totalorder %s44_s29, 0 }
  0x15   : > { %p2106_p8 = por %p61_p5, %p60_p3  ;;  %p174_p10 = scmp.eq.s32.totalorder %s1700_s25, 7 }
  0x16   : > { %p2110_p9 = por %p168_p6, %p54_p1  ;;  %p1758_p12 = scmp.lt.s32.totalorder %s2014_s23, 8 }
  0x17   : > { %s2115_s7 = scalar_select %p45_p7, %s2002_s20, %s47_s27  }
  0x18   : > { %p2117_p11 = por %p174_p10, %p60_p3  ;;  %s2123_s9 = sand.u32 1, %s2002_s20  }
  0x19   : > { %2418 = sst [smem:[#allocation17_spill]] %s2115_s7  ;;  %s1703_s10 = sshll.u32 %s2010_s22, 4 }
  0x1a   : > { %s237_s11 = sand.u32 1, %s2014_s23   ;;  %p2129_p13 = pnand %p1758_p12, %p2098_p4 }
  0x1b   : > { %s2421_s1 = sld [smem:[#allocation19_spill]]  ;;  %s240_s16 = scalar_lea.vmem [#allocation5], %s2123_s9 }
  0x1c   : > { %s247_s17 = sshll.u32 %s240_s16, 4  ;;  %s2138_s27 = scalar_lea.sflag [#allocation6], %s237_s11  ;;  %s248_s17 = int_to_ptr.vmem [resolvable:$true] %s247_s17 }
  0x1d   : > { %p1818_p0 = pneg %p2129_p13  ;;  %s1829_s29 = scalar_lea.vmem %s248_s17, 16 }
  0x1e   : > { %p1830_p1 = scmp.ne.s32.totalorder %s248_s17, %s1829_s29  ;;  %s2016_s28 = smov [#allocation5]  }
  0x1f   : > { %s1834_s26 = sshll.u32 %s2016_s28, 4  ;;  %s1835_s26 = int_to_ptr.vmem [resolvable:$false] %s1834_s26 }
  0x20   : > { %p1832_p2 = pnand %p1830_p1, %p1818_p0  ;;  %s1836_s13 = scalar_lea.vmem %s1835_s26, 32 }
  0x21   : > { %s245_s15 = scalar_lea.hbm %s2421_s1, %s1703_s10  ;;  %p1837_p4 = scmp.lt.s32.totalorder %s248_s17, %s1835_s26 }
  0x22   : > { %p1833_p3 = pneg %p1832_p2  ;;  %p1838_p5 = scmp.lt.s32.totalorder %s1836_s13, %s1829_s29 }
  0x24   : > { %p1839_p6 = por %p1838_p5, %p1837_p4 }
  0x26   : > { %p1840_p7 = pnand %p1839_p6, %p1833_p3 }
  0x28   : > { %1843 = shalt.err (!%p1840_p7)
}
  0x29   : > { %1747 = dma.hbm_to_vmem [thread:$0]  (!%p2129_p13), %s245_s15, 16, %s248_s17, %s2138_s27  }
  0x2a   : > { %p1708_p10 = scmp.ge.s32.totalorder %s2014_s23, 1  ;;  %p275_p12 = scmp.lt.s32.totalorder %s2014_s23, 9 }
  0x2b   : > { %s2423_s0 = sld [smem:[#allocation18_spill]]  ;;  %s223_s29 = scalar_lea.vmem [#allocation2], %s2123_s9 }
  0x2c   : > { %p2150_p1 = pnand %p1708_p10, %p275_p12  ;;  %s230_s28 = sshll.u32 %s223_s29, 4  ;;  %s231_s28 = int_to_ptr.vmem [resolvable:$true] %s230_s28 }
  0x2d   : > { %s1728_s13 = sshll.u32 %s2010_s22, 9  ;;  %s221_s25 = scalar_lea.sflag [#allocation3], %s2123_s9 }
  0x2e   : > { %s1857_s1 = scalar_lea.vmem %s231_s28, 16  ;;  %s2017_s15 = smov [#allocation2]  }
  0x2f   : > { %p1858_p2 = scmp.ne.s32.totalorder %s231_s28, %s1857_s1  ;;  %s1862_s17 = sshll.u32 %s2017_s15, 4  ;;  %s1863_s17 = int_to_ptr.vmem [resolvable:$false] %s1862_s17 }
  0x30   : > { %s1864_s7 = scalar_lea.vmem %s1863_s17, 32  ;;  %p1865_p5 = scmp.lt.s32.totalorder %s231_s28, %s1863_s17 }
  0x31   : > { %s228_s16 = scalar_lea.hbm %s2423_s0, %s1703_s10  ;;  %p1860_p3 = pnand %p1858_p2, %p1818_p0 }
  0x32   : > { %p1866_p6 = scmp.lt.s32.totalorder %s1864_s7, %s1857_s1 }
  0x33   : > { %p1861_p4 = pneg %p1860_p3 }
  0x34   : > { %p1867_p7 = por %p1866_p6, %p1865_p5 }
  0x36   : > { %p1868_p10 = pnand %p1867_p7, %p1861_p4 }
  0x38   : > { %1871 = shalt.err (!%p1868_p10)
}
  0x39   : > { %1744 = dma.hbm_to_vmem [thread:$0]  (!%p2129_p13), %s228_s16, 16, %s231_s28, %s221_s25  }
  0x3a   : > { %s266_s14 = scalar_lea.hbm %s2405_s2, %s1728_s13  ;;  %s2424_s29 = sshll.u32 %s2123_s9, 5 }
  0x3b   : > { %s258_s0 = scalar_lea.vmem [#allocation7], %s2424_s29  ;;  %s2018_s1 = smov [#allocation7]  }
  0x3c   : > { %s267_s22 = sshll.u32 %s258_s0, 4  ;;  %s1890_s7 = sshll.u32 %s2018_s1, 4  ;;  %s268_s22 = int_to_ptr.vmem [resolvable:$true] %s267_s22  ;;  %s1891_s7 = int_to_ptr.vmem [resolvable:$false] %s1890_s7 }
  0x3d   : > { %s1885_s15 = scalar_lea.vmem %s268_s22, 512  ;;  %s1892_s17 = scalar_lea.vmem %s1891_s7, 1024 }
  0x3e   : > { %p1886_p12 = scmp.ne.s32.totalorder %s268_s22, %s1885_s15  ;;  %p1893_p4 = scmp.lt.s32.totalorder %s268_s22, %s1891_s7 }
  0x3f   : > { %p1894_p5 = scmp.lt.s32.totalorder %s1892_s17, %s1885_s15 }
  0x40   : > { %p1888_p2 = pnand %p1886_p12, %p1818_p0 }
  0x41   : > { %p1895_p6 = por %p1894_p5, %p1893_p4 }
  0x42   : > { %p1889_p3 = pneg %p1888_p2 }
  0x44   : > { %p1896_p7 = pnand %p1895_p6, %p1889_p3 }
  0x46   : > { %1899 = shalt.err (!%p1896_p7)
}
  0x47   : > { %s2019_s25 = smov 256   ;;  %s2020_s0 = smov 16  }
  0x48   : > { %1750 = dma.hbm_to_vmem [thread:$0]  (!%p2129_p13), %s266_s14, 512, %s268_s22, %s2138_s27, %s2019_s25, %s2019_s25, %s2020_s0  }
  0x49   : > { %279 = sbr.rel (%p2150_p1) target bundleno = 638 (0x27e), region = 32  ;;  %s2179_s9 = sand.u32 (!%p2150_p1), 1, %s1998_s19  }
  0x4a   : > { %s282_s16 = scalar_lea.sflag (!%p2150_p1), [#allocation3], %s2179_s9  ;;  %s284_s28 = scalar_lea.vmem (!%p2150_p1), [#allocation2], %s2179_s9 }
  0x4e   : > { %1977 = dma.done.wait (%p2106_p8), %s282_s16, 16  }
  0x4f   : > { %1979 = vsyncadd (%p2106_p8), %s282_s16, 4294967280  ;;  %s289_s22 = sand.u32 1, %s2086_s24   ;;  %s292_s27 = scalar_lea.vmem [#allocation5], %s2179_s9 }
  0x50   : > { %s290_s12 = scalar_lea.sflag [#allocation6], %s289_s22 }
  0x51   : > { %1981 = dma.done.wait (%p2106_p8), %s290_s12, 528  }
  0x52   : > { %1983 = vsyncadd (%p2106_p8), %s290_s12, 4294966768  ;;  %v2021_v0 = vmov 0.0   ;;  %v361_v1 = vld [vmem:[%s284_s28] sm:$0x1]  ;;  %vm366_vm1 = vcmask 122880   ;;  %v372_v7 = vlaneseq  ;;  %s1709_s24 = sshll.u32 %s2179_s9, 5 }
  0x53   : > { %460 = vmatprep.mubr.f32.mxu0 %v2021_v0  ;;  %567 = vmatprep.mubr.f32.mxu1 %v2021_v0  ;;  %vm363_vm0 = vcmp.lt.s32.totalorder %v361_v1, 10  ;;  %v362_v2 = vld [vmem:[%s292_s27] sm:$0x1]  ;;  %vm385_vm4 = vcmask 130048   ;;  %s301_s30 = scalar_lea.vmem [#allocation7], %s1709_s24  ;;  %p351_p8 = scmp.lt.s32.totalorder %s2006_s21, 7 }
  0x54   : > { %v2196_v3 = vsel %vm363_vm0, 1.0, %v2021_v0  ;;  %v2204_v8 = vshrl.u32 %v372_v7, 7  ;;  %v371_v16 = vld [vmem:[%s301_s30 + $0x18] sm:$0xff]  ;;  %v370_v17 = vld [vmem:[%s301_s30 + $0x10] sm:$0xff]  ;;  %v369_v18 = vld [vmem:[%s301_s30 + $0x8] sm:$0xff]  ;;  %s348_s29 = scalar_lea.vmem [#allocation9], %s2179_s9 }
  0x55   : > { %v936_v4 = vmul.f32 1e+30, %v2196_v3  ;;  %v2222_v21 = vand.u32 4294901760, %v371_v16  ;;  %v2224_v22 = vand.u32 4294901760, %v370_v17  ;;  %v2226_v23 = vand.u32 4294901760, %v369_v18  ;;  %v368_v24 = vld [vmem:[%s301_s30] sm:$0xff] }
  0x56   : > { %v377_v9 = vsub.s32 0, %v2204_v8  ;;  %v374_v10 = vadd.s32 8, %v2204_v8  ;;  %v2228_v25 = vand.u32 4294901760, %v368_v24  ;;  %s352_s11 = scalar_select %p351_p8, %s2006_s21, 7  ;;  %367 = vst.msk [vmem:[%s348_s29] sm:$0x1] %vm366_vm1, %v2196_v3 }
  0x57   : > { %v2199_v5 = vsub.f32 %v362_v2, %v936_v4  ;;  %421 = vmatprep.subr.mxu0 %v2222_v21  ;;  %v2233_v28 = vsub.f32 %v371_v16, %v2222_v21  ;;  %v2236_v29 = vsub.f32 %v370_v17, %v2224_v22  ;;  %v2239_v30 = vsub.f32 %v369_v18, %v2226_v23  ;;  %s1725_s15 = sshll.u32 %s2006_s21, 4  ;;  %s1513_s1 = sshll.u32 %s348_s29, 4  ;;  %s1514_s1 = int_to_ptr.vmem [resolvable:$true] %s1513_s1 }
  0x58   : > { %v378_v11 = vrot.slane %v361_v1, %v377_v9  ;;  %423 = vmatpush1.msra.mxu0 %v2224_v22  ;;  %v2243_v32 = vsub.f32 %v368_v24, %v2228_v25  ;;  %s1729_s13 = sshll.u32 %s352_s11, 5  ;;  %s1511_s25 = scalar_lea.hbm %s2408_s5, %s1725_s15 }
  0x59   : > { %v938_v6 = vsel %vm366_vm1, %v2199_v5, -inf  ;;  %425 = vmatprep.subr.mxu0 %v2226_v23  ;;  %v2248_v34 = vand.u32 4294901760, %v2233_v28  ;;  %v2251_v35 = vand.u32 4294901760, %v2236_v29  ;;  %v2254_v36 = vand.u32 4294901760, %v2239_v30  ;;  %s358_s14 = scalar_lea.vmem %s2406_s3, %s1729_s13  ;;  %s1481_s0 = scalar_lea.sflag [#allocation10], %s2179_s9 }
  0x5a   : > { %939 = vmax.xlane.f32.xlu0 %v938_v6  ;;  %vm379_vm2 = vcmp.eq.s32.totalorder %v2204_v8, %v378_v11  ;;  %vm380_vm3 = vcmp.eq.s32.totalorder %v374_v10, %v378_v11  ;;  %427 = vmatpush1.msra.mxu0 %v2228_v25  ;;  %v2258_v38 = vand.u32 4294901760, %v2243_v32  ;;  %s1900_s16 = scalar_lea.vmem %s1514_s1, 16  ;;  %s2022_s28 = smov [#allocation9]  }
  0x5b   : > { %v2210_v12 = vsel %vm379_vm2, 1.0, %v2021_v0  ;;  %v2213_v13 = vsel %vm380_vm3, 1.0, %v2021_v0  ;;  %v514_v39 = vsub.f32 %v2233_v28, %v2248_v34  ;;  %v520_v40 = vsub.f32 %v2236_v29, %v2251_v35  ;;  %612 = vmatprep.subr.mxu0 %v2233_v28  ;;  %p1901_p13 = scmp.ne.s32.totalorder %s1514_s1, %s1900_s16  ;;  %s1904_s22 = sshll.u32 %s2022_s28, 4  ;;  %s1905_s22 = int_to_ptr.vmem [resolvable:$false] %s1904_s22 }
  0x5c   : > { %v387_v14 = vsel %vm385_vm4, %v2210_v12, 0  ;;  %v390_v15 = vsel %vm385_vm4, %v2213_v13, 0  ;;  %v526_v41 = vsub.f32 %v2239_v30, %v2254_v36  ;;  %v532_v42 = vsub.f32 %v2243_v32, %v2258_v38  ;;  %s1906_s12 = scalar_lea.vmem %s1905_s22, 32  ;;  %p1907_p10 = scmp.lt.s32.totalorder %s1514_s1, %s1905_s22 }
  0x5d   : > { %v462_v19 = vsub.f32 %v387_v14, %v387_v14  ;;  %v2220_v20 = vsub.f32 %v390_v15, %v390_v15  ;;  %v515_v44 = vand.u32 4294901760, %v514_v39  ;;  %v521_v45 = vand.u32 4294901760, %v520_v40  ;;  %p1902_p0 = pnand %p1901_p13, %p2110_p9  ;;  %p1908_p12 = scmp.lt.s32.totalorder %s1906_s12, %s1900_s16 }
  0x5e   : > { %v527_v46 = vand.u32 4294901760, %v526_v41  ;;  %v533_v47 = vand.u32 4294901760, %v532_v42 }
  0x5f   : > { %v463_v26 = vand.u32 4294901760, %v462_v19  ;;  %v474_v27 = vand.u32 4294901760, %v2220_v20  ;;  %516 = vmatprep.subr.mxu1 %v515_v44  ;;  %p1903_p1 = pneg %p1902_p0  ;;  %p1909_p2 = por %p1908_p12, %p1907_p10 }
  0x60   : > { %522 = vmatpush1.msra.mxu1 %v521_v45 }
  0x61   : > { %v464_v31 = vsub.f32 %v462_v19, %v463_v26  ;;  %v475_v33 = vsub.f32 %v2220_v20, %v474_v27  ;;  %528 = vmatprep.subr.mxu1 %v527_v46  ;;  %p1910_p3 = pnand %p1909_p2, %p1903_p1 }
  0x62   : > { %534 = vmatpush1.msra.mxu1 %v533_v47 }
  0x63   : > { %v465_v37 = vand.u32 4294901760, %v464_v31  ;;  %v476_v43 = vand.u32 4294901760, %v475_v33  ;;  %1716 = vmatmul.mubr.msk.f32.vlgmr.msra.gmra.mxu1 %vm385_vm4, %v2210_v12  ;;  %700 = vmatprep.subr.mxu1 %v2222_v21 }
  0x64   : > { %574 = vmatprep.mubr.f32.mxu1 %v2021_v0  ;;  %702 = vmatpush1.msra.mxu1 %v2224_v22 }
  0x65   : > { %466 = vmatmul.mubr.f32.vlgmr.msra.gmra.mxu0 %v465_v37  ;;  %704 = vmatprep.subr.mxu1 %v2226_v23 }
  0x66   : > { %471 = vmatprep.mubr.f32.mxu0 %v2021_v0  ;;  %615 = vmatpush1.msra.mxu0 %v2236_v29 }
  0x67   : > { %618 = vmatprep.subr.mxu0 %v2239_v30  ;;  %706 = vmatpush1.msra.mxu1 %v2228_v25 }
  0x68   : > { %621 = vmatpush1.msra.mxu0 %v2243_v32  ;;  %1717 = vmatmul.mubr.msk.f32.gmra.mxu1 %vm385_vm4, %v2213_v13 }
  0x69   : > { %477 = vmatmul.mubr.f32.gmra.mxu0 %v476_v43  ;;  %789 = vmatprep.subr.mxu0 %v2248_v34 }
  0x6a   : > { %654 = vmatprep.mubr.f32.mxu0 %v2021_v0  ;;  %739 = vmatprep.mubr.f32.mxu1 %v2021_v0 }
  0x6b   : > { %878 = vmatprep.subr.mxu1 %v2222_v21 }
  0x6c   : > { %743 = vmatmul.mubr.f32.vlgmr.msra.gmra.mxu1 %v463_v26 }
  0x6d   : > { %657 = vmatmul.mubr.f32.vlgmr.msra.gmra.mxu0 %v462_v19  ;;  %748 = vmatprep.mubr.f32.mxu1 %v2021_v0 }
  0x6e   : > { %662 = vmatprep.mubr.f32.mxu0 %v2021_v0  ;;  %793 = vmatpush1.msra.mxu0 %v2251_v35 }
  0x6f   : > { %797 = vmatprep.subr.mxu0 %v2254_v36  ;;  %880 = vmatpush1.msra.mxu1 %v2224_v22 }
  0x70   : > { %801 = vmatpush1.msra.mxu0 %v2258_v38  ;;  %882 = vmatprep.subr.mxu1 %v2226_v23 }
  0x71   : > { %665 = vmatmul.mubr.f32.gmra.mxu0 %v2220_v20  ;;  %981 = vmatprep.subr.mxu0 %v2222_v21 }
  0x72   : > { %834 = vmatprep.mubr.f32.mxu0 %v2021_v0  ;;  %884 = vmatpush1.msra.mxu1 %v2228_v25 }
  0x73   : > { %752 = vmatmul.mubr.f32.gmra.mxu1 %v474_v27  ;;  %1065 = vmatprep.subr.mxu1 %v515_v44 }
  0x74   : > { %917 = vmatprep.mubr.f32.mxu1 %v2021_v0 }
  0x75   : > { %1718 = vmatmul.mubr.msk.f32.vlgmr.msra.gmra.mxu0 %vm385_vm4, %v2210_v12 }
  0x76   : > { %841 = vmatprep.mubr.f32.mxu0 %v2021_v0  ;;  %983 = vmatpush1.msra.mxu0 %v2224_v22 }
  0x77   : > { %985 = vmatprep.subr.mxu0 %v2226_v23  ;;  %1720 = vmatmul.mubr.msk.f32.vlgmr.msra.gmra.mxu1 %vm385_vm4, %v2210_v12 }
  0x78   : > { %987 = vmatpush1.msra.mxu0 %v2228_v25  ;;  %924 = vmatprep.mubr.f32.mxu1 %v2021_v0 }
  0x79   : > { %1719 = vmatmul.mubr.msk.f32.gmra.mxu0 %vm385_vm4, %v2213_v13  ;;  %1154 = vmatprep.subr.mxu0 %v2233_v28 }
  0x7a   : > { %1020 = vmatprep.mubr.f32.mxu0 %v2021_v0  ;;  %1071 = vmatpush1.msra.mxu1 %v521_v45 }
  0x7b   : > { %1077 = vmatprep.subr.mxu1 %v527_v46  ;;  %1721 = vmatmul.mubr.msk.f32.gmra.mxu1 %vm385_vm4, %v2213_v13 }
  0x7c   : > { %1083 = vmatpush1.msra.mxu1 %v533_v47  ;;  %1116 = vmatprep.mubr.f32.mxu1 %v2021_v0 }
  0x7d   : > { %1234 = vmatprep.subr.mxu1 %v2222_v21 }
  0xe3   : > { %v940_v48 = vpop.xlane.xlu0 %939 }
  0xe4   : > { %v941_v49 = vsub.f32 %v2199_v5, %v940_v48 }
  0xe6   : > { %v942_v50 = vmul.f32 1.442695, %v941_v49 }
  0xe8   : > { %1812 = vpow2.f32 %v942_v50 }
  0xf5   : > { %v1813_v51 = vpop.eup %1812 }
  0xf6   : > { %v944_v52 = vsel %vm366_vm1, %v1813_v51, 0.0 }
  0xf7   : > { %945 = vadd.xlane.f32.xlu0 %v944_v52 }
 0x123   : > { %v570_v57 = vpop.f32.mrf.mxu1 }
 0x125   : > { %v467_v53 = vpop.f32.mrf.mxu0  ;;  %v572_v59 = vpop.f32.mrf.mxu1 }
 0x126   : > { %v571_v58 = vadd.f32 %v570_v57, %v467_v53 }
 0x127   : > { %v469_v54 = vpop.f32.mrf.mxu0 }
 0x128   : > { %v573_v61 = vadd.f32 %v572_v59, %v469_v54  ;;  %v577_v62 = vpop.f32.mrf.mxu1 }
 0x129   : > { %v478_v55 = vpop.f32.mrf.mxu0 }
 0x12a   : > { %v578_v1 = vadd.f32 %v577_v62, %v478_v55  ;;  %v579_v4 = vpop.f32.mrf.mxu1 }
 0x12b   : > { %v480_v56 = vpop.f32.mrf.mxu0 }
 0x12c   : > { %v580_v6 = vadd.f32 %v579_v4, %v480_v56  ;;  %v744_v10 = vpop.f32.mrf.mxu1 }
 0x12d   : > { %v658_v60 = vpop.f32.mrf.mxu0 }
 0x12e   : > { %v659_v2 = vadd.f32 %v658_v60, %v571_v58  ;;  %v746_v14 = vpop.f32.mrf.mxu1 }
 0x12f   : > { %v660_v63 = vpop.f32.mrf.mxu0 }
 0x130   : > { %v661_v9 = vadd.f32 %v660_v63, %v573_v61  ;;  %v745_v12 = vadd.f32 %v744_v10, %v659_v2 }
 0x131   : > { %v666_v5 = vpop.f32.mrf.mxu0 }
 0x132   : > { %v667_v13 = vadd.f32 %v666_v5, %v578_v1  ;;  %v747_v16 = vadd.f32 %v746_v14, %v661_v9 }
 0x133   : > { %v668_v11 = vpop.f32.mrf.mxu0  ;;  %v753_v18 = vpop.f32.mrf.mxu1 }
 0x134   : > { %v669_v17 = vadd.f32 %v668_v11, %v580_v6  ;;  %v754_v20 = vadd.f32 %v753_v18, %v667_v13 }
 0x135   : > { %v837_v15 = vpop.f32.mrf.mxu0  ;;  %v755_v26 = vpop.f32.mrf.mxu1 }
 0x136   : > { %v838_v24 = vadd.f32 %v837_v15, %v745_v12  ;;  %v756_v28 = vadd.f32 %v755_v26, %v669_v17 }
 0x137   : > { %v839_v19 = vpop.f32.mrf.mxu0  ;;  %v920_v33 = vpop.f32.mrf.mxu1 }
 0x138   : > { %v840_v31 = vadd.f32 %v839_v19, %v747_v16  ;;  %v921_v39 = vadd.f32 %v920_v33, %v838_v24 }
 0x139   : > { %v844_v27 = vpop.f32.mrf.mxu0  ;;  %v922_v41 = vpop.f32.mrf.mxu1 }
 0x13a   : > { %v845_v40 = vadd.f32 %v844_v27, %v754_v20  ;;  %932 = vst [vmem:[%s358_s14] sm:$0xff] %v921_v39  ;;  %v923_v42 = vadd.f32 %v922_v41, %v840_v31 }
 0x13b   : > { %v846_v37 = vpop.f32.mrf.mxu0  ;;  %v927_v44 = vpop.f32.mrf.mxu1 }
 0x13c   : > { %v847_v43 = vadd.f32 %v846_v37, %v756_v28  ;;  %933 = vst [vmem:[%s358_s14 + $0x8] sm:$0xff] %v923_v42  ;;  %v928_v45 = vadd.f32 %v927_v44, %v845_v40 }
 0x13d   : > { %v929_v46 = vpop.f32.mrf.mxu1 }
 0x13e   : > { %934 = vst [vmem:[%s358_s14 + $0x10] sm:$0x3] %v928_v45  ;;  %v930_v47 = vadd.f32 %v929_v46, %v847_v43 }
 0x140   : > { %935 = vst [vmem:[%s358_s14 + $0x18] sm:$0x3] %v930_v47 }
 0x180   : > { %v946_v48 = vpop.xlane.xlu0 %945 }
 0x181   : > { %1814 = vrcp.f32 %v946_v48 }
 0x18e   : > { %v1815_v49 = vpop.eup %1814 }
 0x18f   : > { %v948_v50 = vmul.f32 %v1815_v49, %v1813_v51 }
 0x191   : > { %v950_v52 = vsel %vm385_vm4, %v948_v50, 0 }
 0x192   : > { %v1021_v53 = vand.u32 4294901760, %v950_v52 }
 0x194   : > { %1118 = vmatmul.mubr.f32.vlgmr.msra.gmra.mxu1 %v1021_v53  ;;  %v1022_v54 = vsub.f32 %v950_v52, %v1021_v53 }
 0x195   : > { %1236 = vmatpush1.msra.mxu1 %v2224_v22  ;;  %1273 = vmatprep.mubr.f32.mxu1 %v2021_v0 }
 0x196   : > { %1238 = vmatprep.subr.mxu1 %v2226_v23  ;;  %v1023_v55 = vand.u32 4294901760, %v1022_v54 }
 0x197   : > { %1240 = vmatpush1.msra.mxu1 %v2228_v25 }
 0x198   : > { %v1024_v56 = vsub.f32 %v1022_v54, %v1023_v55  ;;  %1277 = vmatmul.mubr.f32.vlgmr.msra.gmra.mxu1 %v1023_v55  ;;  %1396 = vmatprep.subr.mxu1 %v2222_v21 }
 0x199   : > { %1398 = vmatpush1.msra.mxu1 %v2224_v22  ;;  %1435 = vmatprep.mubr.f32.mxu1 %v2021_v0 }
 0x19a   : > { %v1025_v51 = vand.u32 4294901760, %v1024_v56  ;;  %1400 = vmatprep.subr.mxu1 %v2226_v23 }
 0x19b   : > { %1402 = vmatpush1.msra.mxu1 %v2228_v25 }
 0x19c   : > { %1026 = vmatmul.mubr.f32.vlgmr.msra.gmra.mxu0 %v1025_v51  ;;  %1437 = vmatmul.mubr.f32.vlgmr.msra.gmra.mxu1 %v1021_v53 }
 0x19d   : > { %1157 = vmatpush1.msra.mxu0 %v2236_v29  ;;  %1196 = vmatprep.mubr.f32.mxu0 %v2021_v0 }
 0x19e   : > { %1160 = vmatprep.subr.mxu0 %v2239_v30 }
 0x19f   : > { %1163 = vmatpush1.msra.mxu0 %v2243_v32 }
 0x1a0   : > { %1314 = vmatprep.subr.mxu0 %v2248_v34  ;;  %1199 = vmatmul.mubr.f32.vlgmr.msra.gmra.mxu0 %v1022_v54 }
 0x1a1   : > { %1318 = vmatpush1.msra.mxu0 %v2251_v35  ;;  %1359 = vmatprep.mubr.f32.mxu0 %v2021_v0 }
 0x1a2   : > { %1322 = vmatprep.subr.mxu0 %v2254_v36 }
 0x1a3   : > { %1326 = vmatpush1.msra.mxu0 %v2258_v38 }
 0x1a4   : > { %1361 = vmatmul.mubr.f32.vlgmr.msra.gmra.mxu0 %v1021_v53 }
 0x1a5   : > { %1913 = shalt.err (!%p1910_p3)
}
 0x1a6   : > { %s1914_s27 = scalar_lea.hbm %s1511_s25, 16  ;;  %s1918_s11 = scalar_lea.hbm %s2408_s5, 128 }
 0x1a7   : > { %p1915_p4 = scmp.ne.s32.totalorder %s1511_s25, %s1914_s27  ;;  %p1919_p7 = scmp.lt.s32.totalorder %s1511_s25, %s2408_s5 }
 0x1a8   : > { %p1920_p8 = scmp.lt.s32.totalorder %s1918_s11, %s1914_s27 }
 0x1a9   : > { %p1916_p5 = pnand %p1915_p4, %p2110_p9 }
 0x1aa   : > { %p1921_p13 = por %p1920_p8, %p1919_p7 }
 0x1ab   : > { %p1917_p6 = pneg %p1916_p5 }
 0x1ad   : > { %p1922_p0 = pnand %p1921_p13, %p1917_p6 }
 0x1af   : > { %1925 = shalt.err (!%p1922_p0)
}
 0x1b0   : > { %1738 = dma.vmem_to_hbm [thread:$0]  (%p2110_p9), %s1514_s1, 16, %s1511_s25, %s1481_s0   ;;  %v2023_v35 = vmov 1966171168   ;;  %vm1463_vm5 = vcmp.lt.s32.totalorder %v372_v7, 256 }
 0x1b1   : > { %v1447_v36 = vunpack.c.l.s4 %v2023_v35  ;;  %s1710_s26 = sshll.u32 %s2179_s9, 1  ;;  %s1730_s14 = sshll.u32 %s2006_s21, 5 }
 0x1b2   : > { %s342_s29 = scalar_lea.vmem [#allocation8], %s1710_s26  ;;  %s1498_s17 = scalar_lea.hbm %s2407_s4, %s1730_s14 }
 0x1b3   : > { %v1448_v63 = vunpack.c.0.s8 %v1447_v36  ;;  %s1500_s15 = sshll.u32 %s342_s29, 4  ;;  %s1476_s25 = scalar_lea.sflag [#allocation4], %s2179_s9  ;;  %s1501_s15 = int_to_ptr.vmem [resolvable:$true] %s1500_s15 }
 0x1b4   : > { %s1926_s0 = scalar_lea.vmem %s1501_s15, 32  ;;  %s2024_s16 = smov [#allocation8]  }
 0x1b5   : > { %v1451_v9 = vsub.s32 %v1448_v63, %v2204_v8  ;;  %p1927_p1 = scmp.ne.s32.totalorder %s1501_s15, %s1926_s0  ;;  %s1930_s21 = sshll.u32 %s2024_s16, 4  ;;  %s1931_s21 = int_to_ptr.vmem [resolvable:$false] %s1930_s21 }
 0x1b6   : > { %s1932_s28 = scalar_lea.vmem %s1931_s21, 64  ;;  %p1933_p2 = scmp.lt.s32.totalorder %s1501_s15, %s1931_s21 }
 0x1b7   : > { %p1928_p10 = pnand %p1927_p1, %p2110_p9  ;;  %p1934_p3 = scmp.lt.s32.totalorder %s1932_s28, %s1926_s0 }
 0x1b9   : > { %p1929_p12 = pneg %p1928_p10  ;;  %p1935_p4 = por %p1934_p3, %p1933_p2 }
 0x1bb   : > { %p1936_p5 = pnand %p1935_p4, %p1929_p12 }
 0x254   : > { %v1119_v0 = vpop.f32.mrf.mxu1 }
 0x256   : > { %v1121_v3 = vpop.f32.mrf.mxu1 }
 0x258   : > { %v1278_v21 = vpop.f32.mrf.mxu1 }
 0x25a   : > { %v1280_v29 = vpop.f32.mrf.mxu1 }
 0x25c   : > { %v1027_v22 = vpop.f32.mrf.mxu0  ;;  %v1438_v59 = vpop.f32.mrf.mxu1 }
 0x25d   : > { %v1120_v25 = vadd.f32 %v1119_v0, %v1027_v22 }
 0x25e   : > { %v1029_v23 = vpop.f32.mrf.mxu0  ;;  %v1440_v4 = vpop.f32.mrf.mxu1 }
 0x25f   : > { %v1122_v32 = vadd.f32 %v1121_v3, %v1029_v23 }
 0x260   : > { %v1200_v30 = vpop.f32.mrf.mxu0 }
 0x261   : > { %v1201_v34 = vadd.f32 %v1200_v30, %v1120_v25 }
 0x262   : > { %v1202_v38 = vpop.f32.mrf.mxu0 }
 0x263   : > { %v1203_v57 = vadd.f32 %v1202_v38, %v1122_v32  ;;  %v1279_v58 = vadd.f32 %v1278_v21, %v1201_v34 }
 0x264   : > { %v1362_v60 = vpop.f32.mrf.mxu0 }
 0x265   : > { %v1363_v61 = vadd.f32 %v1362_v60, %v1279_v58  ;;  %v1281_v62 = vadd.f32 %v1280_v29, %v1203_v57 }
 0x266   : > { %v1364_v1 = vpop.f32.mrf.mxu0 }
 0x267   : > { %v1365_v2 = vadd.f32 %v1364_v1, %v1281_v62  ;;  %v1439_v5 = vadd.f32 %v1438_v59, %v1363_v61 }
 0x269   : > { %v1441_v6 = vadd.f32 %v1440_v4, %v1365_v2 }
 0x26b   : > { %v1445_v10 = vcombine.low %v1439_v5, %v1441_v6 }
 0x26d   : > { %v1452_v11 = vrot.slane %v1445_v10, %v1451_v9 }
 0x26f   : > { %v1459_v12 = vrot.slane %v1452_v11, %v1451_v9 }
 0x271   : > { %1465 = vst.msk [vmem:[%s342_s29] sm:$0x3] %vm1463_vm5, %v1459_v12 }
 0x272   : > { %1939 = shalt.err (!%p1936_p5)
}
 0x273   : > { %s1940_s22 = scalar_lea.hbm %s1498_s17, 32  ;;  %s1944_s27 = scalar_lea.hbm %s2407_s4, 256 }
 0x274   : > { %p1941_p6 = scmp.ne.s32.totalorder %s1498_s17, %s1940_s22  ;;  %p1945_p13 = scmp.lt.s32.totalorder %s1498_s17, %s2407_s4 }
 0x275   : > { %p1946_p0 = scmp.lt.s32.totalorder %s1944_s27, %s1940_s22 }
 0x276   : > { %p1942_p7 = pnand %p1941_p6, %p2110_p9 }
 0x277   : > { %p1947_p1 = por %p1946_p0, %p1945_p13 }
 0x278   : > { %p1943_p8 = pneg %p1942_p7 }
 0x27a   : > { %p1948_p10 = pnand %p1947_p1, %p1943_p8 }
 0x27c   : > { %1951 = shalt.err (!%p1948_p10)
}
 0x27d   : > { %1737 = dma.vmem_to_hbm [thread:$0]  (%p2110_p9), %s1501_s15, 32, %s1498_s17, %s1476_s25  }
 0x27e PF: > { %p1759_p12 = scmp.ge.s32.totalorder %s2014_s23, 2  ;;  %s1537_s11 = sand.u32 1, %s1994_s18  }
 0x27f   : > { %s1538_s13 = scalar_lea.sflag [#allocation4], %s1537_s11 }
 0x280   : > { %p1752_p2 = pnand %p1759_p12, %p2117_p11 }
 0x282   : > { %p1753_p3 = pneg %p1752_p2 }
 0x284   : > { %1985 = dma.done.wait (%p1753_p3), %s1538_s13, 32  }
 0x285   : > { %1987 = vsyncadd (%p1753_p3), %s1538_s13, 4294967264  ;;  %s1547_s10 = scalar_lea.sflag [#allocation10], %s1537_s11 }
 0x286   : > { %1989 = dma.done.wait (%p1753_p3), %s1547_s10, 16  }
 0x287   : > { %1991 = vsyncadd (%p1753_p3), %s1547_s10, 4294967280  ;;  %s28_s23 = sadd.s32 1, %s2014_s23   ;;  %s2425_s6 = sld [smem:[#allocation17_spill]] }
 0x288   : > { %p25_p4 = scmp.ge.s32.totalorder %s28_s23, 10   ;;  %s2426_s21 = sld [smem:[#allocation15_spill]] }
 0x289   : > { %s2427_s22 = sld [smem:[#allocation16_spill]]  ;;  %s2428_s18 = smov %s1998_s19 }
 0x28a   : > { %s2429_s19 = smov %s2002_s20  ;;  %27 = sbr.rel (!%p25_p4) target bundleno = 13 (0xd), region = 130 }
 0x28d   : > { %s2430_s20 = smov %s2425_s6 }
 0x28f   :  { %1551 = vsyncpa [#allocation3], 1 }
 0x290   :  { %1553 = vsyncpa [#allocation3 + $0x1], 1 }
 0x291   :  { %1554 = vsyncpa [#allocation6], 1 }
 0x292   :  { %1556 = vsyncpa [#allocation6 + $0x1], 1 }
 0x293   :  { %1557 = vsyncpa [#allocation4], 1 }
 0x294   :  { %1559 = vsyncpa [#allocation4 + $0x1], 1 }
 0x295   :  { %1560 = vsyncpa [#allocation10], 1 }
 0x296   :  { %1562 = vsyncpa [#allocation10 + $0x1], 1 }

</bundles_post_ra>
